<compile_context>
chip_gen: v7x
topology: tpu7x:2x2x1
jax: 0.10.0
libtpu: 0.0.40
codegen_flags: <defaults>
</compile_context>

<pallas_src>
import jax
import jax.numpy as jnp
from jax import lax
from jax.experimental import pallas as pl
from jax.experimental.pallas import tpu as pltpu

LANE = 128


def output_part_kernel(x_ref, w_ref, b_ref, o_ref):
    # x_ref: (TN, C, HW)   w_ref: (C, Kp) [MXU-native, pre-scaled by 1/HW]
    # b_ref: (1, Kp)       o_ref: (TN, Kp)
    # AdaptiveAvgPool2d((1,1)): widening sum over spatial; 1/HW is folded into w.
    pooled = jnp.sum(x_ref[...], axis=-1, dtype=jnp.float32)       # (TN, C)
    out = lax.dot_general(
        pooled, w_ref[...].astype(jnp.float32),
        dimension_numbers=(((1,), (0,)), ((), ())),
        preferred_element_type=jnp.float32)                        # (TN, Kp)
    o_ref[...] = (out + b_ref[...].astype(jnp.float32)).astype(o_ref.dtype)


def prepare_output_part_params(weight, bias, hw, *, param_dtype=jnp.float32):
    """One-time (load-time) parameter prep.

    weight: (num_classes, C) PyTorch layout; bias: (num_classes,).
    Returns (w_ckp, b_pad): (C, Kp) weight pre-scaled by 1/HW in MXU-native
    layout, and (1, Kp) f32 bias, with Kp = num_classes padded to 128 lanes.
    """
    K, C = weight.shape
    kp = max(LANE, pl.cdiv(K, LANE) * LANE)
    inv_hw = jnp.float32(1.0 / hw)
    w_scaled_t = (weight.astype(jnp.float32) * inv_hw).T            # (C, K)
    w_ckp = jnp.zeros((C, kp), param_dtype).at[:, :K].set(
        w_scaled_t.astype(param_dtype))
    b_pad = jnp.zeros((1, kp), jnp.float32).at[0, :K].set(bias.astype(jnp.float32))
    return w_ckp, b_pad


def _vmem_capacity_bytes():
    try:
        return int(pltpu.get_tpu_info().vmem_capacity_bytes)
    except Exception:
        return 64 << 20  # conservative (v7x per-TC VMEM)


def _pick_batch_tile(n, c, hw, x_itemsize, w_bytes):
    """Largest batch tile that fits VMEM (double-buffered), multiple of 8,
    capped so large batches get >= 2 grid steps for megacore sharding."""
    if n <= 8:
        return n  # single block; tn == N keeps the output block (8,128)-legal
    per_row = c * hw * x_itemsize
    budget = min(_vmem_capacity_bytes() // 2, 48 << 20)
    max_rows = max(8, (budget - w_bytes) // max(1, 2 * per_row))
    tn = int(min(128, (max_rows // 8) * 8))
    tn = max(8, tn)
    # Ensure at least 2 grid steps so ("parallel",) can shard across TensorCores.
    tn = min(tn, max(8, (((n + 1) // 2) // 8) * 8))
    return tn


def output_part_forward(x_nchw, w_ckp, b_pad, num_classes):
    """x_nchw: (N, C, H, W); w_ckp/b_pad from prepare_output_part_params().

    Accumulation is f32; output dtype follows x dtype.
    """
    N, C, H, W = x_nchw.shape
    HW = H * W
    Kp = w_ckp.shape[1]
    K = num_classes

    x_itemsize = jnp.dtype(x_nchw.dtype).itemsize
    w_bytes = w_ckp.size * jnp.dtype(w_ckp.dtype).itemsize
    b_bytes = b_pad.size * 4

    tn = _pick_batch_tile(N, C, HW, x_itemsize, w_bytes)
    Np = pl.cdiv(N, tn) * tn

    # Free reshape (no transpose): NCHW -> (N, C, HW); pad batch to a multiple
    # of tn only when needed (padded rows are garbage and sliced off below).
    x_nc_hw = x_nchw.reshape(N, C, HW)
    if Np != N:
        x_nc_hw = jnp.pad(x_nc_hw, ((0, Np - N), (0, 0), (0, 0)))

    grid = (Np // tn,)

    x_tile_bytes = tn * C * HW * x_itemsize
    out_tile_bytes = tn * Kp * x_itemsize
    vmem_limit = int(max(
        2 * (x_tile_bytes + out_tile_bytes) + 2 * (w_bytes + b_bytes) + (1 << 20),
        16 << 20))

    cost = pl.CostEstimate(
        flops=Np * C * HW + 2 * Np * C * Kp,
        transcendentals=0,
        bytes_accessed=(Np * C * HW * x_itemsize       # x read
                        + w_bytes + b_bytes            # weight + bias read
                        + Np * Kp * x_itemsize))       # output write

    out_padded = pl.pallas_call(
        output_part_kernel,
        out_shape=jax.ShapeDtypeStruct((Np, Kp), x_nchw.dtype),
        grid_spec=pltpu.PrefetchScalarGridSpec(
            num_scalar_prefetch=0,
            grid=grid,
            in_specs=[
                pl.BlockSpec((tn, C, HW), lambda i: (i, 0, 0)),
                pl.BlockSpec((C, Kp), lambda i: (0, 0)),
                pl.BlockSpec((1, Kp), lambda i: (0, 0)),
            ],
            out_specs=pl.BlockSpec((tn, Kp), lambda i: (i, 0)),
        ),
        compiler_params=pltpu.CompilerParams(
            dimension_semantics=("parallel",),
            vmem_limit_bytes=vmem_limit),
        cost_estimate=cost,
    )(x_nc_hw, w_ckp, b_pad)

    # Drop batch padding and lane padding.
    return out_padded[:N, :K]


if __name__ == "__main__":
    # config = 18 -> in_channel = 512 (ResNet-18/34 head)
    config = 18
    in_channel = 512 if config in [18, 34] else 2048
    num_classes = 16

    N, C, H, W = 2, in_channel, 8, 8

    key = jax.random.PRNGKey(0)
    kx, kw, kb = jax.random.split(key, 3)

    x = jax.random.normal(kx, (N, C, H, W), dtype=jnp.float32)
    # Deterministic Linear init (PyTorch-style uniform(-1/sqrt(C), 1/sqrt(C)))
    bound = 1.0 / jnp.sqrt(jnp.float32(C))
    weight = jax.random.uniform(kw, (num_classes, C), jnp.float32, -bound, bound)
    bias = jax.random.uniform(kb, (num_classes,), jnp.float32, -bound, bound)

    # Hoisted, one-time parameter prep (model-load time, not per forward).
    w_ckp, b_pad = prepare_output_part_params(weight, bias, H * W)
    w_ckp, b_pad = jax.block_until_ready((w_ckp, b_pad))

    fwd = jax.jit(lambda xx: output_part_forward(xx, w_ckp, b_pad, num_classes))
    out = fwd(x)
    jax.block_until_ready(out)

    # Pure-JAX reference check (pool -> flatten -> linear)
    ref = jnp.mean(x, axis=(2, 3)) @ weight.T + bias
    assert out.shape == (N, num_classes)
    assert jnp.allclose(out, ref, atol=1e-4, rtol=1e-4), "mismatch vs reference"

    print("KERNEL_OK")
</pallas_src>

<mosaic_0001>
module attributes {stable_mosaic.version = 11 : i64} {
  func.func @output_part_kernel(%arg0: i32, %arg1: memref<2x512x64xf32, #tpu.memory_space<vmem>>, %arg2: memref<512x128xf32, #tpu.memory_space<vmem>>, %arg3: memref<1x128xf32, #tpu.memory_space<vmem>>, %arg4: memref<2x128xf32, #tpu.memory_space<vmem>>) attributes {dimension_semantics = [#tpu.dimension_semantics<parallel>], iteration_bounds = array<i64: 1>, scalar_prefetch = 0 : i64, scratch_operands = 0 : i64, tpu.core_type = #tpu.core_type<tc>, window_params = [{transform_indices = @transform_0, window_bounds = array<i64: 2, 512, 64>}, {pipeline_mode = #tpu.pipeline_mode<synchronous>, transform_indices = @transform_1, window_bounds = array<i64: 512, 128>}, {pipeline_mode = #tpu.pipeline_mode<synchronous>, transform_indices = @transform_2, window_bounds = array<i64: 1, 128>}, {transform_indices = @transform_3, window_bounds = array<i64: 2, 128>}]} {
    %c0 = arith.constant 0 : index
    %c0_0 = arith.constant 0 : index
    %c0_1 = arith.constant 0 : index
    %0 = vector.load %arg1[%c0, %c0_0, %c0_1] : memref<2x512x64xf32, #tpu.memory_space<vmem>>, vector<2x512x64xf32>
    %cst = arith.constant dense<0.000000e+00> : vector<2x512xf32>
    %1 = vector.multi_reduction <add>, %0, %cst [2] : vector<2x512x64xf32> to vector<2x512xf32>
    %c0_2 = arith.constant 0 : index
    %c0_3 = arith.constant 0 : index
    %2 = vector.load %arg2[%c0_2, %c0_3] : memref<512x128xf32, #tpu.memory_space<vmem>>, vector<512x128xf32>
    %cst_4 = arith.constant dense<0.000000e+00> : vector<2x128xf32>
    %3 = tpu.matmul %1, %2, %cst_4 {dimension_numbers = #tpu.dot_dimension_numbers<[1], [0], [0], [1], [0, 0, 1, 1], [], []>} : vector<2x512xf32>, vector<512x128xf32>, vector<2x128xf32> -> vector<2x128xf32>
    %c0_5 = arith.constant 0 : index
    %c0_6 = arith.constant 0 : index
    %4 = vector.load %arg3[%c0_5, %c0_6] : memref<1x128xf32, #tpu.memory_space<vmem>>, vector<1x128xf32>
    %5 = vector.broadcast %4 : vector<1x128xf32> to vector<2x128xf32>
    %6 = arith.addf %3, %5 : vector<2x128xf32>
    %c0_7 = arith.constant 0 : index
    %c0_8 = arith.constant 0 : index
    %7 = vector.load %arg4[%c0_7, %c0_8] : memref<2x128xf32, #tpu.memory_space<vmem>>, vector<2x128xf32>
    tpu.vector_store %arg4[%c0_7, %c0_8], %6 {strides = array<i32>} : memref<2x128xf32, #tpu.memory_space<vmem>>, vector<2x128xf32>,
    return
  }
  func.func @transform_0(%arg0: i32) -> (i32, i32, i32) {
    %c0_i32 = arith.constant 0 : i32
    %c0_i32_0 = arith.constant 0 : i32
    %c0_i32_1 = arith.constant 0 : i32
    return %arg0, %c0_i32, %c0_i32_0 : i32, i32, i32
  }
  func.func @transform_1(%arg0: i32) -> (i32, i32) {
    %c0_i32 = arith.constant 0 : i32
    %c0_i32_0 = arith.constant 0 : i32
    %c0_i32_1 = arith.constant 0 : i32
    return %c0_i32, %c0_i32_0 : i32, i32
  }
  func.func @transform_2(%arg0: i32) -> (i32, i32) {
    %c0_i32 = arith.constant 0 : i32
    %c0_i32_0 = arith.constant 0 : i32
    %c0_i32_1 = arith.constant 0 : i32
    return %c0_i32, %c0_i32_0 : i32, i32
  }
  func.func @transform_3(%arg0: i32) -> (i32, i32) {
    %c0_i32 = arith.constant 0 : i32
    %c0_i32_0 = arith.constant 0 : i32
    return %arg0, %c0_i32 : i32, i32
  }
}

</mosaic_0001>

<bundles_post_ra>
// kernel: _lambda_.1
= control target key start
LH: loop header
LB: loop body
LE: loop exit
PB: predicated region body
PF: predicated region fallthrough
CT: control target
= control target key end

     0   :  { %vm143_vm0 = vcmask 523264   ;;  %s2919_s0 = inlined_call_operand.vmem [shape: f32[2,512,64], index: 0, kind: input, shape index: {}]   ;;  %s2920_s1 = inlined_call_operand.vmem [shape: f32[512,128], index: 1, kind: input, shape index: {}]   ;;  %s2921_s2 = inlined_call_operand.vmem [shape: f32[1,128], index: 2, kind: input, shape index: {}]   ;;  %s2922_s3 = inlined_call_operand.hbm [shape: f32[2,128], index: 3, kind: output, shape index: {}]  }
   0x1   :  { %v95_v0 = vld [vmem:[%s2919_s0 + $0x280] sm:$0xff]  ;;  %v96_v2 = vld [vmem:[%s2919_s0 + $0x288] sm:$0xff]  ;;  %v33_v13 = vld [vmem:[%s2919_s0 + $0x90] sm:$0xff] }
   0x2   :  { %v31_v1 = vld [vmem:[%s2919_s0 + $0x80] sm:$0xff]  ;;  %v384_v3 = vsel %vm143_vm0, %v95_v0, 0.0  ;;  %v32_v5 = vld [vmem:[%s2919_s0 + $0x88] sm:$0xff]  ;;  %v387_v6 = vsel %vm143_vm0, %v96_v2, 0.0  ;;  %v198_v15 = vsel %vm143_vm0, %v33_v13, 0.0  ;;  %v97_v16 = vld [vmem:[%s2919_s0 + $0x290] sm:$0xff] }
   0x3   :  { %v192_v4 = vsel %vm143_vm0, %v31_v1, 0.0  ;;  %385 = vadd.xlane.f32.xlu1 %v384_v3  ;;  %v195_v7 = vsel %vm143_vm0, %v32_v5, 0.0  ;;  %v16_v8 = vld [vmem:[%s2919_s0 + $0x8] sm:$0xff]  ;;  %v15_v9 = vld [vmem:[%s2919_s0] sm:$0xff]  ;;  %v390_v18 = vsel %vm143_vm0, %v97_v16, 0.0  ;;  %v34_v20 = vld [vmem:[%s2919_s0 + $0x98] sm:$0xff] }
   0x4   :  { %193 = vadd.xlane.f32.xlu0 %v192_v4  ;;  %v147_v10 = vsel %vm143_vm0, %v16_v8, 0.0  ;;  %v144_v11 = vsel %vm143_vm0, %v15_v9, 0.0  ;;  %v79_v12 = vld [vmem:[%s2919_s0 + $0x200] sm:$0xff]  ;;  %v80_v17 = vld [vmem:[%s2919_s0 + $0x208] sm:$0xff]  ;;  %v17_v21 = vld [vmem:[%s2919_s0 + $0x10] sm:$0xff]  ;;  %v201_v22 = vsel %vm143_vm0, %v34_v20, 0.0 }
   0x5   :  { %v336_v14 = vsel %vm143_vm0, %v79_v12, 0.0  ;;  %v339_v19 = vsel %vm143_vm0, %v80_v17, 0.0  ;;  %v150_v23 = vsel %vm143_vm0, %v17_v21, 0.0  ;;  %v64_v24 = vld [vmem:[%s2919_s0 + $0x188] sm:$0xff]  ;;  %v63_v25 = vld [vmem:[%s2919_s0 + $0x180] sm:$0xff]  ;;  %v98_v28 = vld [vmem:[%s2919_s0 + $0x298] sm:$0xff] }
   0x6   :  { %v291_v26 = vsel %vm143_vm0, %v64_v24, 0.0  ;;  %v288_v27 = vsel %vm143_vm0, %v63_v25, 0.0  ;;  %v81_v29 = vld [vmem:[%s2919_s0 + $0x210] sm:$0xff]  ;;  %v393_v30 = vsel %vm143_vm0, %v98_v28, 0.0 }
   0x7   :  { %388 = vadd.xlane.f32.xlu1 %v387_v6  ;;  %v342_v31 = vsel %vm143_vm0, %v81_v29, 0.0 }
   0x8   :  { %196 = vadd.xlane.f32.xlu0 %v195_v7 }
   0xb   :  { %148 = vadd.xlane.f32.xlu1 %v147_v10 }
   0xc   :  { %145 = vadd.xlane.f32.xlu0 %v144_v11 }
   0xf   :  { %337 = vadd.xlane.f32.xlu1 %v336_v14 }
  0x10   :  { %199 = vadd.xlane.f32.xlu0 %v198_v15 }
  0x13   :  { %391 = vadd.xlane.f32.xlu1 %v390_v18 }
  0x14   :  { %340 = vadd.xlane.f32.xlu0 %v339_v19 }
  0x17   :  { %202 = vadd.xlane.f32.xlu1 %v201_v22 }
  0x18   :  { %151 = vadd.xlane.f32.xlu0 %v150_v23 }
  0x1b   :  { %292 = vadd.xlane.f32.xlu1 %v291_v26 }
  0x1c   :  { %289 = vadd.xlane.f32.xlu0 %v288_v27 }
  0x1d   :  { %8 = vsyncpa [#allocation3], 0  ;;  %v128_v32 = vld [vmem:[%s2919_s0 + $0x388] sm:$0xff]  ;;  %v127_v33 = vld [vmem:[%s2919_s0 + $0x380] sm:$0xff]  ;;  %vm738_vm1 = vcmask 130112   ;;  %vm745_vm2 = vcmask 195712  }
  0x1e   :  { %v483_v34 = vsel %vm143_vm0, %v128_v32, 0.0  ;;  %v480_v35 = vsel %vm143_vm0, %v127_v33, 0.0  ;;  %v35_v36 = vld [vmem:[%s2919_s0 + $0xa0] sm:$0xff]  ;;  %v18_v37 = vld [vmem:[%s2919_s0 + $0x18] sm:$0xff]  ;;  %v48_v40 = vld [vmem:[%s2919_s0 + $0x108] sm:$0xff]  ;;  %vm752_vm3 = vcmask 261312  }
  0x1f   :  { %394 = vadd.xlane.f32.xlu1 %v393_v30  ;;  %v204_v38 = vsel %vm143_vm0, %v35_v36, 0.0  ;;  %v153_v39 = vsel %vm143_vm0, %v18_v37, 0.0  ;;  %v47_v41 = vld [vmem:[%s2919_s0 + $0x100] sm:$0xff]  ;;  %v243_v42 = vsel %vm143_vm0, %v48_v40, 0.0  ;;  %v82_v44 = vld [vmem:[%s2919_s0 + $0x218] sm:$0xff]  ;;  %v65_v45 = vld [vmem:[%s2919_s0 + $0x190] sm:$0xff] }
  0x20   :  { %343 = vadd.xlane.f32.xlu0 %v342_v31  ;;  %v240_v43 = vsel %vm143_vm0, %v47_v41, 0.0  ;;  %v345_v46 = vsel %vm143_vm0, %v82_v44, 0.0  ;;  %v294_v47 = vsel %vm143_vm0, %v65_v45, 0.0  ;;  %v111_v48 = vld [vmem:[%s2919_s0 + $0x300] sm:$0xff]  ;;  %v129_v52 = vld [vmem:[%s2919_s0 + $0x390] sm:$0xff]  ;;  %v112_v53 = vld [vmem:[%s2919_s0 + $0x308] sm:$0xff] }
  0x21   :  { %v99_v49 = vld [vmem:[%s2919_s0 + $0x2a0] sm:$0xff]  ;;  %v432_v50 = vsel %vm143_vm0, %v111_v48, 0.0  ;;  %v486_v54 = vsel %vm143_vm0, %v129_v52, 0.0  ;;  %v435_v55 = vsel %vm143_vm0, %v112_v53, 0.0  ;;  %v36_v56 = vld [vmem:[%s2919_s0 + $0xa8] sm:$0xff]  ;;  %v66_v60 = vld [vmem:[%s2919_s0 + $0x198] sm:$0xff] }
  0x22   :  { %v396_v51 = vsel %vm143_vm0, %v99_v49, 0.0  ;;  %v19_v57 = vld [vmem:[%s2919_s0 + $0x20] sm:$0xff]  ;;  %v207_v58 = vsel %vm143_vm0, %v36_v56, 0.0  ;;  %v49_v61 = vld [vmem:[%s2919_s0 + $0x110] sm:$0xff]  ;;  %v297_v62 = vsel %vm143_vm0, %v66_v60, 0.0  ;;  %v100_v0 = vld [vmem:[%s2919_s0 + $0x2a8] sm:$0xff] }
  0x23   :  { %484 = vadd.xlane.f32.xlu1 %v483_v34  ;;  %v156_v59 = vsel %vm143_vm0, %v19_v57, 0.0  ;;  %v246_v63 = vsel %vm143_vm0, %v49_v61, 0.0  ;;  %v83_v1 = vld [vmem:[%s2919_s0 + $0x220] sm:$0xff]  ;;  %v399_v2 = vsel %vm143_vm0, %v100_v0, 0.0  ;;  %v130_v4 = vld [vmem:[%s2919_s0 + $0x398] sm:$0xff]  ;;  %v113_v5 = vld [vmem:[%s2919_s0 + $0x310] sm:$0xff] }
  0x24   :  { %481 = vadd.xlane.f32.xlu0 %v480_v35  ;;  %v348_v3 = vsel %vm143_vm0, %v83_v1, 0.0  ;;  %v489_v6 = vsel %vm143_vm0, %v130_v4, 0.0  ;;  %v438_v7 = vsel %vm143_vm0, %v113_v5, 0.0  ;;  %v37_v8 = vld [vmem:[%s2919_s0 + $0xb0] sm:$0xff]  ;;  %v20_v9 = vld [vmem:[%s2919_s0 + $0x28] sm:$0xff]  ;;  %v67_v12 = vld [vmem:[%s2919_s0 + $0x1a0] sm:$0xff] }
  0x25   :  { %v210_v10 = vsel %vm143_vm0, %v37_v8, 0.0  ;;  %v159_v11 = vsel %vm143_vm0, %v20_v9, 0.0  ;;  %v50_v13 = vld [vmem:[%s2919_s0 + $0x118] sm:$0xff]  ;;  %v300_v14 = vsel %vm143_vm0, %v67_v12, 0.0  ;;  %v101_v16 = vld [vmem:[%s2919_s0 + $0x2b0] sm:$0xff]  ;;  %v84_v17 = vld [vmem:[%s2919_s0 + $0x228] sm:$0xff] }
  0x26   :  { %v249_v15 = vsel %vm143_vm0, %v50_v13, 0.0  ;;  %v402_v18 = vsel %vm143_vm0, %v101_v16, 0.0  ;;  %v351_v19 = vsel %vm143_vm0, %v84_v17, 0.0  ;;  %v131_v20 = vld [vmem:[%s2919_s0 + $0x3a0] sm:$0xff]  ;;  %v114_v21 = vld [vmem:[%s2919_s0 + $0x318] sm:$0xff]  ;;  %v21_v25 = vld [vmem:[%s2919_s0 + $0x30] sm:$0xff] }
  0x27   :  { %205 = vadd.xlane.f32.xlu1 %v204_v38  ;;  %v492_v22 = vsel %vm143_vm0, %v131_v20, 0.0  ;;  %v441_v23 = vsel %vm143_vm0, %v114_v21, 0.0  ;;  %v38_v24 = vld [vmem:[%s2919_s0 + $0xb8] sm:$0xff]  ;;  %v162_v27 = vsel %vm143_vm0, %v21_v25, 0.0  ;;  %v68_v28 = vld [vmem:[%s2919_s0 + $0x1a8] sm:$0xff]  ;;  %v51_v29 = vld [vmem:[%s2919_s0 + $0x120] sm:$0xff] }
  0x28   :  { %154 = vadd.xlane.f32.xlu0 %v153_v39  ;;  %v213_v26 = vsel %vm143_vm0, %v38_v24, 0.0  ;;  %v303_v30 = vsel %vm143_vm0, %v68_v28, 0.0  ;;  %v252_v31 = vsel %vm143_vm0, %v51_v29, 0.0  ;;  %v102_v32 = vld [vmem:[%s2919_s0 + $0x2b8] sm:$0xff]  ;;  %v85_v33 = vld [vmem:[%s2919_s0 + $0x230] sm:$0xff]  ;;  %v132_v36 = vld [vmem:[%s2919_s0 + $0x3a8] sm:$0xff] }
  0x29   :  { %v405_v34 = vsel %vm143_vm0, %v102_v32, 0.0  ;;  %v354_v35 = vsel %vm143_vm0, %v85_v33, 0.0  ;;  %v115_v37 = vld [vmem:[%s2919_s0 + $0x320] sm:$0xff]  ;;  %v495_v38 = vsel %vm143_vm0, %v132_v36, 0.0  ;;  %v22_v41 = vld [vmem:[%s2919_s0 + $0x38] sm:$0xff]  ;;  %v69_v44 = vld [vmem:[%s2919_s0 + $0x1b0] sm:$0xff] }
  0x2a   :  { %v444_v39 = vsel %vm143_vm0, %v115_v37, 0.0  ;;  %v39_v40 = vld [vmem:[%s2919_s0 + $0xc0] sm:$0xff]  ;;  %v52_v45 = vld [vmem:[%s2919_s0 + $0x128] sm:$0xff]  ;;  %v86_v49 = vld [vmem:[%s2919_s0 + $0x238] sm:$0xff]  ;;  %vm759_vm4 = vcmask 326912   ;;  %vm766_vm5 = vcmask 392512  }
  0x2b   :  { %244 = vadd.xlane.f32.xlu1 %v243_v42  ;;  %v216_v42 = vsel %vm143_vm0, %v39_v40, 0.0  ;;  %v103_v48 = vld [vmem:[%s2919_s0 + $0x2c0] sm:$0xff]  ;;  %v133_v52 = vld [vmem:[%s2919_s0 + $0x3b0] sm:$0xff]  ;;  %v116_v53 = vld [vmem:[%s2919_s0 + $0x328] sm:$0xff]  ;;  %vm773_vm6 = vcmask 458112   ;;  %vm780_vm7 = vcmask 523712  }
  0x2c   :  { %241 = vadd.xlane.f32.xlu0 %v240_v43  ;;  %v165_v43 = vsel %vm143_vm0, %v22_v41, 0.0  ;;  %v40_v56 = vld [vmem:[%s2919_s0 + $0xc8] sm:$0xff]  ;;  %v23_v57 = vld [vmem:[%s2919_s0 + $0x40] sm:$0xff]  ;;  %v70_v60 = vld [vmem:[%s2919_s0 + $0x1b8] sm:$0xff]  ;;  %vm787_vm8 = vcmask 589312   ;;  %vm794_vm9 = vcmask 654912  }
  0x2d   :  { %v53_v61 = vld [vmem:[%s2919_s0 + $0x130] sm:$0xff]  ;;  %v104_v0 = vld [vmem:[%s2919_s0 + $0x2c8] sm:$0xff]  ;;  %v87_v1 = vld [vmem:[%s2919_s0 + $0x240] sm:$0xff]  ;;  %vm801_vm10 = vcmask 720512   ;;  %vm808_vm11 = vcmask 786112   ;;  %vm815_vm12 = vcmask 851712  }
  0x2e   :  { %v134_v4 = vld [vmem:[%s2919_s0 + $0x3b8] sm:$0xff]  ;;  %v117_v5 = vld [vmem:[%s2919_s0 + $0x330] sm:$0xff]  ;;  %v24_v9 = vld [vmem:[%s2919_s0 + $0x48] sm:$0xff]  ;;  %vm822_vm13 = vcmask 917312   ;;  %vm829_vm14 = vcmask 982912   ;;  %vm836_vm15 = vcmask 1048512  }
  0x2f   :  { %346 = vadd.xlane.f32.xlu1 %v345_v46  ;;  %v306_v46 = vsel %vm143_vm0, %v69_v44, 0.0  ;;  %v41_v8 = vld [vmem:[%s2919_s0 + $0xd0] sm:$0xff]  ;;  %v171_v12 = vsel %vm143_vm0, %v24_v9, 0.0  ;;  %v71_v13 = vld [vmem:[%s2919_s0 + $0x1c0] sm:$0xff]  ;;  %v88_v20 = vld [vmem:[%s2919_s0 + $0x248] sm:$0xff]  ;;  %s1715_s17 = smov [#allocation2]  }
  0x30   :  { %295 = vadd.xlane.f32.xlu0 %v294_v47  ;;  %v255_v47 = vsel %vm143_vm0, %v52_v45, 0.0  ;;  %v312_v16 = vsel %vm143_vm0, %v71_v13, 0.0  ;;  %v363_v25 = vsel %vm143_vm0, %v88_v20, 0.0  ;;  %v135_v28 = vld [vmem:[%s2919_s0 + $0x3c0] sm:$0xff]  ;;  %v118_v29 = vld [vmem:[%s2919_s0 + $0x338] sm:$0xff]  ;;  %v25_v40 = vld [vmem:[%s2919_s0 + $0x50] sm:$0xff] }
  0x31   :  { %v504_v32 = vsel %vm143_vm0, %v135_v28, 0.0  ;;  %v453_v33 = vsel %vm143_vm0, %v118_v29, 0.0  ;;  %s1547_s18 = sshll.u32 %s1715_s17, 4  ;;  %s1548_s18 = int_to_ptr.vmem [resolvable:$true] %s1547_s18 }
  0x32   :  { %s1691_s19 = scalar_lea.vmem %s1548_s18, 32  ;;  %p1696_p1 = scmp.lt.s32.totalorder %s1548_s18, %s1548_s18 }
  0x33   :  { %433 = vadd.xlane.f32.xlu1 %v432_v50  ;;  %v408_v50 = vsel %vm143_vm0, %v103_v48, 0.0  ;;  %p1692_p0 = scmp.ne.s32.totalorder %s1548_s18, %s1691_s19  ;;  %p1697_p2 = scmp.lt.s32.totalorder %s1691_s19, %s1691_s19 }
  0x34   :  { %397 = vadd.xlane.f32.xlu0 %v396_v51  ;;  %v357_v51 = vsel %vm143_vm0, %v86_v49, 0.0 }
  0x35   :  { %p1698_p3 = por %p1697_p2, %p1696_p1 }
  0x37   :  { %487 = vadd.xlane.f32.xlu1 %v486_v54  ;;  %v498_v54 = vsel %vm143_vm0, %v133_v52, 0.0  ;;  %p1699_p4 = pnand %p1698_p3, %p1692_p0 }
  0x38   :  { %436 = vadd.xlane.f32.xlu0 %v435_v55  ;;  %v447_v55 = vsel %vm143_vm0, %v116_v53, 0.0 }
  0x3b   :  { %208 = vadd.xlane.f32.xlu1 %v207_v58  ;;  %v219_v58 = vsel %vm143_vm0, %v40_v56, 0.0 }
  0x3c   :  { %157 = vadd.xlane.f32.xlu0 %v156_v59  ;;  %v168_v59 = vsel %vm143_vm0, %v23_v57, 0.0 }
  0x3f   :  { %298 = vadd.xlane.f32.xlu1 %v297_v62  ;;  %v309_v62 = vsel %vm143_vm0, %v70_v60, 0.0 }
  0x40   :  { %247 = vadd.xlane.f32.xlu0 %v246_v63  ;;  %v258_v63 = vsel %vm143_vm0, %v53_v61, 0.0 }
  0x43   :  { %400 = vadd.xlane.f32.xlu1 %v399_v2  ;;  %v411_v2 = vsel %vm143_vm0, %v104_v0, 0.0 }
  0x44   :  { %349 = vadd.xlane.f32.xlu0 %v348_v3  ;;  %v360_v3 = vsel %vm143_vm0, %v87_v1, 0.0 }
  0x47   :  { %490 = vadd.xlane.f32.xlu1 %v489_v6  ;;  %v501_v6 = vsel %vm143_vm0, %v134_v4, 0.0 }
  0x48   :  { %439 = vadd.xlane.f32.xlu0 %v438_v7  ;;  %v450_v7 = vsel %vm143_vm0, %v117_v5, 0.0 }
  0x4b   :  { %211 = vadd.xlane.f32.xlu1 %v210_v10  ;;  %v727_v10 = vlaneseq }
  0x4c   :  { %160 = vadd.xlane.f32.xlu0 %v159_v11  ;;  %v222_v11 = vsel %vm143_vm0, %v41_v8, 0.0 }
  0x4f   :  { %301 = vadd.xlane.f32.xlu1 %v300_v14  ;;  %v54_v14 = vld [vmem:[%s2919_s0 + $0x138] sm:$0xff] }
  0x50   :  { %250 = vadd.xlane.f32.xlu0 %v249_v15  ;;  %v2022_v15 = vand.u32 127, %v727_v10  ;;  %v261_v17 = vsel %vm143_vm0, %v54_v14, 0.0 }
  0x52   :  { %v733_v21 = vadd.s32 4294967288, %v2022_v15  ;;  %v747_v60 = vadd.s32 4294967272, %v2022_v15 }
  0x53   :  { %403 = vadd.xlane.f32.xlu1 %v402_v18  ;;  %v2026_v18 = vshrl.u32 %v727_v10, 7 }
  0x54   :  { %352 = vadd.xlane.f32.xlu0 %v351_v19  ;;  %v105_v19 = vld [vmem:[%s2919_s0 + $0x2d0] sm:$0xff] }
  0x55   :  { %v414_v24 = vsel %vm143_vm0, %v105_v19, 0.0  ;;  %v2096_v5 = vsub.s32 %v747_v60, %v2026_v18  ;;  %v26_v19 = vld [vmem:[%s2919_s0 + $0x58] sm:$0xff] }
  0x57   :  { %493 = vadd.xlane.f32.xlu1 %v492_v22 }
  0x58   :  { %442 = vadd.xlane.f32.xlu0 %v441_v23 }
  0x5b   :  { %214 = vadd.xlane.f32.xlu1 %v213_v26  ;;  %v2039_v26 = vsub.s32 %v2022_v15, %v2026_v18 }
  0x5c   :  { %163 = vadd.xlane.f32.xlu0 %v162_v27  ;;  %v2042_v27 = vsub.s32 %v733_v21, %v2026_v18 }
  0x5f   :  { %304 = vadd.xlane.f32.xlu1 %v303_v30 }
  0x60   :  { %253 = vadd.xlane.f32.xlu0 %v252_v31 }
  0x63   :  { %406 = vadd.xlane.f32.xlu1 %v405_v34  ;;  %v740_v34 = vadd.s32 4294967280, %v2022_v15 }
  0x64   :  { %355 = vadd.xlane.f32.xlu0 %v354_v35 }
  0x65   :  { %v2070_v49 = vsub.s32 %v740_v34, %v2026_v18 }
  0x67   :  { %496 = vadd.xlane.f32.xlu1 %v495_v38 }
  0x68   :  { %445 = vadd.xlane.f32.xlu0 %v444_v39  ;;  %v42_v39 = vld [vmem:[%s2919_s0 + $0xd8] sm:$0xff] }
  0x69   :  { %v225_v45 = vsel %vm143_vm0, %v42_v39, 0.0  ;;  %v107_v39 = vld [vmem:[%s2919_s0 + $0x2e0] sm:$0xff] }
  0x6b   :  { %217 = vadd.xlane.f32.xlu1 %v216_v42 }
  0x6c   :  { %166 = vadd.xlane.f32.xlu0 %v165_v43 }
  0x6f   :  { %307 = vadd.xlane.f32.xlu1 %v306_v46  ;;  %v174_v46 = vsel %vm143_vm0, %v25_v40, 0.0  ;;  %v90_v40 = vld [vmem:[%s2919_s0 + $0x258] sm:$0xff] }
  0x70   :  { %256 = vadd.xlane.f32.xlu0 %v255_v47 }
  0x73   :  { %409 = vadd.xlane.f32.xlu1 %v408_v50  ;;  %v72_v50 = vld [vmem:[%s2919_s0 + $0x1c8] sm:$0xff] }
  0x74   :  { %358 = vadd.xlane.f32.xlu0 %v357_v51  ;;  %v55_v51 = vld [vmem:[%s2919_s0 + $0x140] sm:$0xff] }
  0x75   :  { %v264_v56 = vsel %vm143_vm0, %v55_v51, 0.0 }
  0x77   :  { %499 = vadd.xlane.f32.xlu1 %v498_v54 }
  0x78   :  { %448 = vadd.xlane.f32.xlu0 %v447_v55  ;;  %v315_v55 = vsel %vm143_vm0, %v72_v50, 0.0 }
  0x7b   :  { %220 = vadd.xlane.f32.xlu1 %v219_v58  ;;  %v106_v58 = vld [vmem:[%s2919_s0 + $0x2d8] sm:$0xff] }
  0x7c   :  { %169 = vadd.xlane.f32.xlu0 %v168_v59  ;;  %v89_v59 = vld [vmem:[%s2919_s0 + $0x250] sm:$0xff]  ;;  %v417_v0 = vsel %vm143_vm0, %v106_v58, 0.0 }
  0x7d   :  { %v366_v1 = vsel %vm143_vm0, %v89_v59, 0.0 }
  0x7f   :  { %310 = vadd.xlane.f32.xlu1 %v309_v62 }
  0x80   :  { %259 = vadd.xlane.f32.xlu0 %v258_v63 }
  0x83   :  { %412 = vadd.xlane.f32.xlu1 %v411_v2 }
  0x84   :  { %361 = vadd.xlane.f32.xlu0 %v360_v3 }
  0x87   :  { %502 = vadd.xlane.f32.xlu1 %v501_v6  ;;  %v136_v6 = vld [vmem:[%s2919_s0 + $0x3c8] sm:$0xff] }
  0x88   :  { %451 = vadd.xlane.f32.xlu0 %v450_v7  ;;  %v119_v7 = vld [vmem:[%s2919_s0 + $0x340] sm:$0xff] }
  0x89   :  { %v456_v13 = vsel %vm143_vm0, %v119_v7, 0.0 }
  0x8b   :  { %223 = vadd.xlane.f32.xlu1 %v222_v11 }
  0x8c   :  { %172 = vadd.xlane.f32.xlu0 %v171_v12  ;;  %v507_v12 = vsel %vm143_vm0, %v136_v6, 0.0 }
  0x8f   :  { %313 = vadd.xlane.f32.xlu1 %v312_v16 }
  0x90   :  { %262 = vadd.xlane.f32.xlu0 %v261_v17  ;;  %v386_v22 = vpop.xlane.xlu1 %385  ;;  %v43_v17 = vld [vmem:[%s2919_s0 + $0xe0] sm:$0xff] }
  0x91   :  { %v194_v23 = vpop.xlane.xlu0 %193  ;;  %v1157_v35 = vrot.slane %v386_v22, %v2039_v26 }
  0x92   :  { %v841_v36 = vrot.slane %v194_v23, %v2039_v26 }
  0x93   :  { %415 = vadd.xlane.f32.xlu1 %v414_v24  ;;  %v228_v24 = vsel %vm143_vm0, %v43_v17, 0.0 }
  0x94   :  { %364 = vadd.xlane.f32.xlu0 %v363_v25  ;;  %v389_v30 = vpop.xlane.xlu1 %388  ;;  %v177_v25 = vsel %vm143_vm0, %v26_v19, 0.0  ;;  %v108_v19 = vld [vmem:[%s2919_s0 + $0x2e8] sm:$0xff] }
  0x95   :  { %v197_v31 = vpop.xlane.xlu0 %196  ;;  %v1161_v37 = vrot.slane %v389_v30, %v2042_v27  ;;  %v73_v30 = vld [vmem:[%s2919_s0 + $0x1d0] sm:$0xff] }
  0x96   :  { %v845_v38 = vrot.slane %v197_v31, %v2042_v27  ;;  %v56_v31 = vld [vmem:[%s2919_s0 + $0x148] sm:$0xff] }
  0x97   :  { %v1162_v41 = vsel %vm738_vm1, %v1161_v37, %v1157_v35  ;;  %505 = vadd.xlane.f32.xlu1 %v504_v32  ;;  %v318_v35 = vsel %vm143_vm0, %v73_v30, 0.0  ;;  %v138_v30 = vld [vmem:[%s2919_s0 + $0x3d8] sm:$0xff] }
  0x98   :  { %v846_v42 = vsel %vm738_vm1, %v845_v38, %v841_v36  ;;  %454 = vadd.xlane.f32.xlu0 %v453_v33  ;;  %v149_v43 = vpop.xlane.xlu1 %148  ;;  %v267_v36 = vsel %vm143_vm0, %v56_v31, 0.0  ;;  %v121_v31 = vld [vmem:[%s2919_s0 + $0x350] sm:$0xff] }
  0x99   :  { %v146_v44 = vpop.xlane.xlu0 %145  ;;  %v737_v47 = vrot.slane %v149_v43, %v2042_v27 }
  0x9a   :  { %v732_v48 = vrot.slane %v146_v44, %v2039_v26 }
  0x9b   :  { %226 = vadd.xlane.f32.xlu1 %v225_v45 }
  0x9c   :  { %v739_v52 = vsel %vm738_vm1, %v737_v47, %v732_v48  ;;  %175 = vadd.xlane.f32.xlu0 %v174_v46  ;;  %v338_v53 = vpop.xlane.xlu1 %337  ;;  %v420_v46 = vsel %vm143_vm0, %v107_v39, 0.0  ;;  %v369_v47 = vsel %vm143_vm0, %v90_v40, 0.0 }
  0x9d   :  { %v200_v54 = vpop.xlane.xlu0 %199  ;;  %v1078_v2 = vrot.slane %v338_v53, %v2039_v26  ;;  %v120_v53 = vld [vmem:[%s2919_s0 + $0x348] sm:$0xff] }
  0x9e   :  { %v850_v57 = vrot.slane %v200_v54, %v2070_v49  ;;  %v459_v58 = vsel %vm143_vm0, %v120_v53, 0.0  ;;  %v58_v53 = vld [vmem:[%s2919_s0 + $0x158] sm:$0xff] }
  0x9f   :  { %316 = vadd.xlane.f32.xlu1 %v315_v55 }
  0xa0   :  { %v851_v61 = vsel %vm745_vm2, %v850_v57, %v846_v42  ;;  %265 = vadd.xlane.f32.xlu0 %v264_v56  ;;  %v392_v62 = vpop.xlane.xlu1 %391 }
  0xa1   :  { %v341_v63 = vpop.xlane.xlu0 %340  ;;  %v1166_v3 = vrot.slane %v392_v62, %v2070_v49  ;;  %v27_v62 = vld [vmem:[%s2919_s0 + $0x60] sm:$0xff] }
  0xa2   :  { %v1082_v4 = vrot.slane %v341_v63, %v2042_v27 }
  0xa3   :  { %v1167_v8 = vsel %vm745_vm2, %v1166_v3, %v1162_v41  ;;  %418 = vadd.xlane.f32.xlu1 %v417_v0  ;;  %v754_v41 = vadd.s32 4294967264, %v2022_v15 }
  0xa4   :  { %v1083_v9 = vsel %vm738_vm1, %v1082_v4, %v1078_v2  ;;  %367 = vadd.xlane.f32.xlu0 %v366_v1  ;;  %v203_v10 = vpop.xlane.xlu1 %202  ;;  %v180_v4 = vsel %vm143_vm0, %v27_v62, 0.0  ;;  %v109_v62 = vld [vmem:[%s2919_s0 + $0x2f0] sm:$0xff] }
  0xa5   :  { %v152_v11 = vpop.xlane.xlu0 %151  ;;  %v855_v14 = vrot.slane %v203_v10, %v2096_v5  ;;  %v2147_v51 = vsub.s32 %v754_v41, %v2026_v18 }
  0xa6   :  { %v744_v16 = vrot.slane %v152_v11, %v2070_v49 }
  0xa7   :  { %v856_v20 = vsel %vm752_vm3, %v855_v14, %v851_v61  ;;  %508 = vadd.xlane.f32.xlu1 %v507_v12  ;;  %v44_v61 = vld [vmem:[%s2919_s0 + $0xe8] sm:$0xff] }
  0xa8   :  { %v746_v21 = vsel %vm745_vm2, %v744_v16, %v739_v52  ;;  %457 = vadd.xlane.f32.xlu0 %v456_v13  ;;  %v293_v22 = vpop.xlane.xlu1 %292  ;;  %v137_v52 = vld [vmem:[%s2919_s0 + $0x3d0] sm:$0xff]  ;;  %v231_v3 = vsel %vm143_vm0, %v44_v61, 0.0 }
  0xa9   :  { %v290_v23 = vpop.xlane.xlu0 %289  ;;  %v1003_v28 = vrot.slane %v293_v22, %v2042_v27  ;;  %v510_v57 = vsel %vm143_vm0, %v137_v52, 0.0  ;;  %v75_v52 = vld [vmem:[%s2919_s0 + $0x1e0] sm:$0xff] }
  0xaa   :  { %v999_v29 = vrot.slane %v290_v23, %v2039_v26 }
  0xab   :  { %229 = vadd.xlane.f32.xlu1 %v228_v24 }
  0xac   :  { %v1004_v32 = vsel %vm738_vm1, %v1003_v28, %v999_v29  ;;  %178 = vadd.xlane.f32.xlu0 %v177_v25  ;;  %v395_v33 = vpop.xlane.xlu1 %394  ;;  %v423_v25 = vsel %vm143_vm0, %v108_v19, 0.0 }
  0xad   :  { %v344_v34 = vpop.xlane.xlu0 %343  ;;  %v1171_v37 = vrot.slane %v395_v33, %v2096_v5 }
  0xae   :  { %v1087_v38 = vrot.slane %v344_v34, %v2070_v49 }
  0xaf   :  { %v1172_v42 = vsel %vm752_vm3, %v1171_v37, %v1167_v8  ;;  %319 = vadd.xlane.f32.xlu1 %v318_v35  ;;  %v74_v8 = vld [vmem:[%s2919_s0 + $0x1d8] sm:$0xff]  ;;  %v462_v37 = vsel %vm143_vm0, %v121_v31, 0.0 }
  0xb0   :  { %v1088_v43 = vsel %vm745_vm2, %v1087_v38, %v1083_v9  ;;  %268 = vadd.xlane.f32.xlu0 %v267_v36  ;;  %v485_v44 = vpop.xlane.xlu1 %484  ;;  %v57_v9 = vld [vmem:[%s2919_s0 + $0x150] sm:$0xff]  ;;  %v321_v13 = vsel %vm143_vm0, %v74_v8, 0.0  ;;  %v513_v36 = vsel %vm143_vm0, %v138_v30, 0.0 }
  0xb1   :  { %v482_v45 = vpop.xlane.xlu0 %481  ;;  %v1319_v48 = vrot.slane %v485_v44, %v2042_v27  ;;  %v270_v14 = vsel %vm143_vm0, %v57_v9, 0.0  ;;  %v139_v9 = vld [vmem:[%s2919_s0 + $0x3e0] sm:$0xff] }
  0xb2   :  { %v1315_v50 = vrot.slane %v482_v45, %v2039_v26 }
  0xb3   :  { %421 = vadd.xlane.f32.xlu1 %v420_v46 }
  0xb4   :  { %v1320_v54 = vsel %vm738_vm1, %v1319_v48, %v1315_v50  ;;  %370 = vadd.xlane.f32.xlu0 %v369_v47  ;;  %v206_v55 = vpop.xlane.xlu1 %205 }
  0xb5   :  { %v155_v56 = vpop.xlane.xlu0 %154  ;;  %v860_v59 = vrot.slane %v206_v55, %v2147_v51 }
  0xb6   :  { %v751_v60 = vrot.slane %v155_v56, %v2096_v5 }
  0xb7   :  { %v861_v63 = vsel %vm759_vm4, %v860_v59, %v856_v20  ;;  %511 = vadd.xlane.f32.xlu1 %v510_v57  ;;  %v91_v20 = vld [vmem:[%s2919_s0 + $0x260] sm:$0xff]  ;;  %v273_v59 = vsel %vm143_vm0, %v58_v53, 0.0  ;;  %v529_v53 = vld [vmem:[%s2920_s1 + $0x8] sm:$0xff] }
  0xb8   :  { %v753_v0 = vsel %vm752_vm3, %v751_v60, %v746_v21  ;;  %460 = vadd.xlane.f32.xlu0 %v459_v58  ;;  %v245_v1 = vpop.xlane.xlu1 %244  ;;  %v372_v28 = vsel %vm143_vm0, %v91_v20, 0.0  ;;  %v324_v58 = vsel %vm143_vm0, %v75_v52, 0.0  ;;  %v528_v52 = vld [vmem:[%s2920_s1] sm:$0xff] }
  0xb9   :  { %v242_v2 = vpop.xlane.xlu0 %241  ;;  %v924_v6 = vrot.slane %v245_v1, %v2042_v27 }
  0xba   :  { %v920_v7 = vrot.slane %v242_v2, %v2039_v26 }
  0xbb   :  { %232 = vadd.xlane.f32.xlu1 %v231_v3 }
  0xbc   :  { %v2179_v10 = vsel %vm738_vm1, %v924_v6, %v920_v7  ;;  %181 = vadd.xlane.f32.xlu0 %v180_v4  ;;  %v347_v11 = vpop.xlane.xlu1 %346  ;;  %v426_v4 = vsel %vm143_vm0, %v109_v62, 0.0  ;;  %v123_v62 = vld [vmem:[%s2919_s0 + $0x360] sm:$0xff] }
  0xbd   :  { %v296_v12 = vpop.xlane.xlu0 %295  ;;  %v1092_v16 = vrot.slane %v347_v11, %v2096_v5  ;;  %v768_v11 = vadd.s32 4294967248, %v2022_v15 }
  0xbe   :  { %v1008_v17 = vrot.slane %v296_v12, %v2070_v49 }
  0xbf   :  { %v2192_v21 = vsel %vm752_vm3, %v1092_v16, %v1088_v43  ;;  %322 = vadd.xlane.f32.xlu1 %v321_v13  ;;  %v28_v43 = vld [vmem:[%s2919_s0 + $0x68] sm:$0xff] }
  0xc0   :  { %v1009_v22 = vsel %vm745_vm2, %v1008_v17, %v1004_v32  ;;  %271 = vadd.xlane.f32.xlu0 %v270_v14  ;;  %v434_v23 = vpop.xlane.xlu1 %433  ;;  %v761_v32 = vadd.s32 4294967256, %v2022_v15  ;;  %v183_v47 = vsel %vm143_vm0, %v28_v43, 0.0  ;;  %v516_v17 = vsel %vm143_vm0, %v139_v9, 0.0 }
  0xc1   :  { %v398_v24 = vpop.xlane.xlu0 %397  ;;  %v1236_v38 = vrot.slane %v434_v23, %v2039_v26  ;;  %v2266_v23 = vsub.s32 %v768_v11, %v2026_v18  ;;  %v468_v11 = vsel %vm143_vm0, %v123_v62, 0.0  ;;  %v577_v62 = vld [vmem:[%s2920_s1 + $0x188] sm:$0xff] }
  0xc2   :  { %v1176_v29 = vrot.slane %v398_v24, %v2147_v51  ;;  %v2212_v41 = vsub.s32 %v761_v32, %v2026_v18  ;;  %v46_v24 = vld [vmem:[%s2919_s0 + $0xf8] sm:$0xff] }
  0xc3   :  { %424 = vadd.xlane.f32.xlu1 %v423_v25  ;;  %v237_v30 = vsel %vm143_vm0, %v46_v24, 0.0 }
  0xc4   :  { %v1177_v33 = vsel %vm759_vm4, %v1176_v29, %v1172_v42  ;;  %373 = vadd.xlane.f32.xlu0 %v372_v28  ;;  %v488_v34 = vpop.xlane.xlu1 %487  ;;  %v45_v42 = vld [vmem:[%s2919_s0 + $0xf0] sm:$0xff] }
  0xc5   :  { %v437_v35 = vpop.xlane.xlu0 %436  ;;  %v1324_v39 = vrot.slane %v488_v34, %v2070_v49  ;;  %v234_v46 = vsel %vm143_vm0, %v45_v42, 0.0  ;;  %v76_v34 = vld [vmem:[%s2919_s0 + $0x1e8] sm:$0xff] }
  0xc6   :  { %v1240_v40 = vrot.slane %v437_v35, %v2042_v27  ;;  %v59_v35 = vld [vmem:[%s2919_s0 + $0x160] sm:$0xff] }
  0xc7   :  { %v1325_v44 = vsel %vm745_vm2, %v1324_v39, %v1320_v54  ;;  %514 = vadd.xlane.f32.xlu1 %v513_v36  ;;  %v276_v42 = vsel %vm143_vm0, %v59_v35, 0.0  ;;  %v94_v35 = vld [vmem:[%s2919_s0 + $0x278] sm:$0xff] }
  0xc8   :  { %v1241_v45 = vsel %vm738_vm1, %v1240_v40, %v1236_v38  ;;  %463 = vadd.xlane.f32.xlu0 %v462_v37  ;;  %v209_v26 = vpop.xlane.xlu1 %208  ;;  %v327_v40 = vsel %vm143_vm0, %v76_v34, 0.0 }
  0xc9   :  { %v158_v27 = vpop.xlane.xlu0 %157  ;;  %v865_v48 = vrot.slane %v209_v26, %v2212_v41  ;;  %v93_v26 = vld [vmem:[%s2919_s0 + $0x270] sm:$0xff] }
  0xca   :  { %v758_v50 = vrot.slane %v158_v27, %v2147_v51  ;;  %v544_v27 = vld [vmem:[%s2920_s1 + $0x80] sm:$0xff] }
  0xcb   :  { %v866_v54 = vsel %vm766_vm5, %v865_v48, %v861_v63  ;;  %235 = vadd.xlane.f32.xlu1 %v234_v46  ;;  %v92_v63 = vld [vmem:[%s2919_s0 + $0x268] sm:$0xff] }
  0xcc   :  { %v760_v55 = vsel %vm759_vm4, %v758_v50, %v753_v0  ;;  %184 = vadd.xlane.f32.xlu0 %v183_v47  ;;  %v299_v56 = vpop.xlane.xlu1 %298  ;;  %v375_v6 = vsel %vm143_vm0, %v92_v63, 0.0  ;;  %v545_v46 = vld [vmem:[%s2920_s1 + $0x88] sm:$0xff]  ;;  %v775_v63 = vadd.s32 4294967240, %v2022_v15 }
  0xcd   :  { %v248_v57 = vpop.xlane.xlu0 %247  ;;  %v1013_v60 = vrot.slane %v299_v56, %v2096_v5  ;;  %v1626_v50 = vpack.c.bf16 %v545_v46, %v544_v27 }
  0xce   :  { %v929_v61 = vrot.slane %v248_v57, %v2070_v49  ;;  %v378_v57 = vsel %vm143_vm0, %v93_v26, 0.0  ;;  %v535_v26 = vld [vmem:[%s2920_s1 + $0x38] sm:$0xff] }
  0xcf   :  { %v1014_v0 = vsel %vm752_vm3, %v1013_v60, %v1009_v22  ;;  %325 = vadd.xlane.f32.xlu1 %v324_v58  ;;  %v1628_v58 = vpack.c.bf16 %v529_v53, %v528_v52  ;;  %1627 = vmatprep.subr.bf16.mxu0 %v1626_v50 }
  0xd0   :  { %v930_v1 = vsel %vm745_vm2, %v929_v61, %v2179_v10  ;;  %274 = vadd.xlane.f32.xlu0 %v273_v59  ;;  %v401_v2 = vpop.xlane.xlu1 %400  ;;  %v122_v10 = vld [vmem:[%s2919_s0 + $0x358] sm:$0xff]  ;;  %v140_v61 = vld [vmem:[%s2919_s0 + $0x3e8] sm:$0xff] }
  0xd1   :  { %v350_v3 = vpop.xlane.xlu0 %349  ;;  %v1181_v7 = vrot.slane %v401_v2, %v2212_v41  ;;  %v465_v19 = vsel %vm143_vm0, %v122_v10, 0.0  ;;  %1629 = vmatpush3.bf16.msra.mxu0 %v1628_v58  ;;  %v519_v10 = vsel %vm143_vm0, %v140_v61, 0.0  ;;  %v576_v58 = vld [vmem:[%s2920_s1 + $0x180] sm:$0xff] }
  0xd2   :  { %v1097_v8 = vrot.slane %v350_v3, %v2147_v51 }
  0xd3   :  { %v1182_v12 = vsel %vm766_vm5, %v1181_v7, %v1177_v33  ;;  %427 = vadd.xlane.f32.xlu1 %v426_v4  ;;  %v531_v7 = vld [vmem:[%s2920_s1 + $0x18] sm:$0xff] }
  0xd4   :  { %v1098_v13 = vsel %vm759_vm4, %v1097_v8, %v2192_v21  ;;  %376 = vadd.xlane.f32.xlu0 %v375_v6  ;;  %v491_v14 = vpop.xlane.xlu1 %490  ;;  %v29_v21 = vld [vmem:[%s2919_s0 + $0x70] sm:$0xff] }
  0xd5   :  { %v440_v16 = vpop.xlane.xlu0 %439  ;;  %v1329_v20 = vrot.slane %v491_v14, %v2096_v5  ;;  %v186_v31 = vsel %vm143_vm0, %v29_v21, 0.0  ;;  %v530_v6 = vld [vmem:[%s2920_s1 + $0x10] sm:$0xff]  ;;  %v532_v21 = vld [vmem:[%s2920_s1 + $0x20] sm:$0xff] }
  0xd6   :  { %v1245_v22 = vrot.slane %v440_v16, %v2070_v49  ;;  %v2358_v16 = vsub.s32 %v775_v63, %v2026_v18  ;;  %v536_v63 = vld [vmem:[%s2920_s1 + $0x40] sm:$0xff] }
  0xd7   :  { %v2275_v25 = vsel %vm752_vm3, %v1329_v20, %v1325_v44  ;;  %517 = vadd.xlane.f32.xlu1 %v516_v17  ;;  %v60_v17 = vld [vmem:[%s2919_s0 + $0x168] sm:$0xff]  ;;  %v548_v20 = vld [vmem:[%s2920_s1 + $0xa0] sm:$0xff] }
  0xd8   :  { %v2278_v28 = vsel %vm745_vm2, %v1245_v22, %v1241_v45  ;;  %466 = vadd.xlane.f32.xlu0 %v465_v19  ;;  %v212_v49 = vpop.xlane.xlu1 %211  ;;  %v110_v45 = vld [vmem:[%s2919_s0 + $0x2f8] sm:$0xff] }
  0xd9   :  { %v161_v29 = vpop.xlane.xlu0 %160  ;;  %v870_v32 = vrot.slane %v212_v49, %v2266_v23  ;;  %v429_v56 = vsel %vm143_vm0, %v110_v45, 0.0  ;;  %v30_v19 = vld [vmem:[%s2919_s0 + $0x78] sm:$0xff]  ;;  %v533_v49 = vld [vmem:[%s2920_s1 + $0x28] sm:$0xff]  ;;  %v534_v45 = vld [vmem:[%s2920_s1 + $0x30] sm:$0xff] }
  0xda   :  { %v765_v33 = vrot.slane %v161_v29, %v2212_v41 }
  0xdb   :  { %v2291_v36 = vsel %vm773_vm6, %v870_v32, %v866_v54  ;;  %238 = vadd.xlane.f32.xlu1 %v237_v30 }
  0xdc   :  { %v2294_v37 = vsel %vm766_vm5, %v765_v33, %v760_v55  ;;  %187 = vadd.xlane.f32.xlu0 %v186_v31  ;;  %v302_v38 = vpop.xlane.xlu1 %301  ;;  %v189_v31 = vsel %vm143_vm0, %v30_v19, 0.0  ;;  %v554_v19 = vld [vmem:[%s2920_s1 + $0xd0] sm:$0xff] }
  0xdd   :  { %v251_v39 = vpop.xlane.xlu0 %250  ;;  %v1018_v43 = vrot.slane %v302_v38, %v2147_v51  ;;  %v77_v38 = vld [vmem:[%s2919_s0 + $0x1f0] sm:$0xff] }
  0xde   :  { %v934_v44 = vrot.slane %v251_v39, %v2096_v5  ;;  %v550_v39 = vld [vmem:[%s2920_s1 + $0xb0] sm:$0xff]  ;;  %v330_v50 = vsel %vm143_vm0, %v77_v38, 0.0  ;;  %v563_v38 = vld [vmem:[%s2920_s1 + $0x118] sm:$0xff] }
  0xdf   :  { %v2313_v47 = vsel %vm759_vm4, %v1018_v43, %v1014_v0  ;;  %328 = vadd.xlane.f32.xlu1 %v327_v40  ;;  %v546_v0 = vld [vmem:[%s2920_s1 + $0x90] sm:$0xff]  ;;  %v551_v40 = vld [vmem:[%s2920_s1 + $0xb8] sm:$0xff] }
  0xe0   :  { %v2316_v48 = vsel %vm752_vm3, %v934_v44, %v930_v1  ;;  %277 = vadd.xlane.f32.xlu0 %v276_v42  ;;  %v404_v54 = vpop.xlane.xlu1 %403  ;;  %v547_v1 = vld [vmem:[%s2920_s1 + $0x98] sm:$0xff]  ;;  %v1638_v44 = vpack.c.bf16 %v551_v40, %v550_v39 }
  0xe1   :  { %v353_v55 = vpop.xlane.xlu0 %352  ;;  %v1186_v59 = vrot.slane %v404_v54, %v2266_v23  ;;  %v1630_v4 = vpack.c.bf16 %v547_v1, %v546_v0  ;;  %v141_v54 = vld [vmem:[%s2919_s0 + $0x3f0] sm:$0xff] }
  0xe2   :  { %v1102_v60 = vrot.slane %v353_v55, %v2212_v41  ;;  %v124_v55 = vld [vmem:[%s2919_s0 + $0x368] sm:$0xff] }
  0xe3   :  { %v2342_v2 = vsel %vm773_vm6, %v1186_v59, %v1182_v12  ;;  %430 = vadd.xlane.f32.xlu1 %v429_v56  ;;  %v1632_v12 = vpack.c.bf16 %v531_v7, %v530_v6  ;;  %1631 = vmatprep.subr.bf16.mxu0 %v1630_v4  ;;  %v552_v56 = vld [vmem:[%s2920_s1 + $0xc0] sm:$0xff]  ;;  %v471_v4 = vsel %vm143_vm0, %v124_v55, 0.0  ;;  %v1658_v6 = vpack.c.bf16 %v577_v62, %v576_v58 }
  0xe4   :  { %v2345_v3 = vsel %vm766_vm5, %v1102_v60, %v1098_v13  ;;  %379 = vadd.xlane.f32.xlu0 %v378_v57  ;;  %v494_v8 = vpop.xlane.xlu1 %493  ;;  %v553_v57 = vld [vmem:[%s2920_s1 + $0xc8] sm:$0xff]  ;;  %v564_v62 = vld [vmem:[%s2920_s1 + $0x120] sm:$0xff] }
  0xe5   :  { %v443_v9 = vpop.xlane.xlu0 %442  ;;  %v1334_v13 = vrot.slane %v494_v8, %v2147_v51  ;;  %1633 = vmatpush3.bf16.msra.mxu0 %v1632_v12  ;;  %v1642_v61 = vpack.c.bf16 %v553_v57, %v552_v56  ;;  %v560_v8 = vld [vmem:[%s2920_s1 + $0x100] sm:$0xff]  ;;  %v78_v12 = vld [vmem:[%s2919_s0 + $0x1f8] sm:$0xff]  ;;  %1659 = vmatprep.subr.bf16.mxu1 %v1658_v6  ;;  %v558_v6 = vld [vmem:[%s2920_s1 + $0xf0] sm:$0xff] }
  0xe6   :  { %v1250_v14 = vrot.slane %v443_v9, %v2096_v5  ;;  %v549_v5 = vld [vmem:[%s2920_s1 + $0xa8] sm:$0xff] }
  0xe7   :  { %v2374_v22 = vsel %vm759_vm4, %v1334_v13, %v2275_v25  ;;  %520 = vadd.xlane.f32.xlu1 %v519_v10  ;;  %v279_v25 = vsel %vm143_vm0, %v60_v17, 0.0  ;;  %v1634_v32 = vpack.c.bf16 %v549_v5, %v548_v20  ;;  %v561_v9 = vld [vmem:[%s2920_s1 + $0x108] sm:$0xff]  ;;  %v61_v13 = vld [vmem:[%s2919_s0 + $0x170] sm:$0xff]  ;;  %v555_v20 = vld [vmem:[%s2920_s1 + $0xd8] sm:$0xff] }
  0xe8   :  { %v2378_v24 = vsel %vm752_vm3, %v1250_v14, %v2278_v28  ;;  %469 = vadd.xlane.f32.xlu0 %v468_v11  ;;  %v215_v29 = vpop.xlane.xlu1 %214  ;;  %v1636_v28 = vpack.c.bf16 %v533_v49, %v532_v21  ;;  %v782_v14 = vadd.s32 4294967232, %v2022_v15  ;;  %v1660_v17 = vpack.c.bf16 %v561_v9, %v560_v8  ;;  %v578_v5 = vld [vmem:[%s2920_s1 + $0x190] sm:$0xff] }
  0xe9   :  { %v164_v30 = vpop.xlane.xlu0 %163  ;;  %v875_v33 = vrot.slane %v215_v29, %v2358_v16  ;;  %1635 = vmatprep.subr.bf16.mxu0 %v1634_v32  ;;  %v1646_v29 = vpack.c.bf16 %v555_v20, %v554_v19  ;;  %v582_v8 = vld [vmem:[%s2920_s1 + $0x1b0] sm:$0xff] }
  0xea   :  { %v772_v34 = vrot.slane %v164_v30, %v2266_v23  ;;  %1637 = vmatpush3.bf16.msra.mxu0 %v1636_v28  ;;  %v579_v30 = vld [vmem:[%s2920_s1 + $0x198] sm:$0xff]  ;;  %v282_v28 = vsel %vm143_vm0, %v61_v13, 0.0  ;;  %1661 = vmatpush3.bf16.msra.mxu1 %v1660_v17  ;;  %v542_v13 = vld [vmem:[%s2920_s1 + $0x70] sm:$0xff] }
  0xeb   :  { %v2404_v42 = vsel %vm780_vm7, %v875_v33, %v2291_v36  ;;  %280 = vadd.xlane.f32.xlu1 %v279_v25  ;;  %v381_v36 = vsel %vm143_vm0, %v94_v35, 0.0  ;;  %1639 = vmatprep.subr.bf16.mxu0 %v1638_v44  ;;  %v538_v25 = vld [vmem:[%s2920_s1 + $0x50] sm:$0xff]  ;;  %v1662_v33 = vpack.c.bf16 %v579_v30, %v578_v5  ;;  %v2506_v44 = vsub.s32 %v782_v14, %v2026_v18  ;;  %v567_v30 = vld [vmem:[%s2920_s1 + $0x138] sm:$0xff] }
  0xec   :  { %v2408_v43 = vsel %vm773_vm6, %v772_v34, %v2294_v37  ;;  %190 = vadd.xlane.f32.xlu0 %v189_v31  ;;  %v305_v27 = vpop.xlane.xlu1 %304  ;;  %v1640_v37 = vpack.c.bf16 %v535_v26, %v534_v45  ;;  %v562_v35 = vld [vmem:[%s2920_s1 + $0x110] sm:$0xff]  ;;  %v142_v45 = vld [vmem:[%s2919_s0 + $0x3f8] sm:$0xff] }
  0xed   :  { %v254_v46 = vpop.xlane.xlu0 %253  ;;  %v1023_v52 = vrot.slane %v305_v27, %v2212_v41  ;;  %v125_v26 = vld [vmem:[%s2919_s0 + $0x370] sm:$0xff]  ;;  %v1664_v27 = vpack.c.bf16 %v563_v38, %v562_v35  ;;  %1663 = vmatprep.subr.bf16.mxu1 %v1662_v33  ;;  %v568_v35 = vld [vmem:[%s2920_s1 + $0x140] sm:$0xff]  ;;  %v569_v38 = vld [vmem:[%s2920_s1 + $0x148] sm:$0xff] }
  0xee   :  { %v939_v53 = vrot.slane %v254_v46, %v2147_v51  ;;  %1641 = vmatpush3.bf16.msra.mxu0 %v1640_v37  ;;  %v556_v46 = vld [vmem:[%s2920_s1 + $0xe0] sm:$0xff]  ;;  %v474_v57 = vsel %vm143_vm0, %v125_v26, 0.0  ;;  %v789_v26 = vadd.s32 4294967224, %v2022_v15 }
  0xef   :  { %v2437_v59 = vsel %vm766_vm5, %v1023_v52, %v2313_v47  ;;  %382 = vadd.xlane.f32.xlu1 %v381_v36  ;;  %v537_v47 = vld [vmem:[%s2920_s1 + $0x48] sm:$0xff]  ;;  %1643 = vmatprep.subr.bf16.mxu0 %v1642_v61  ;;  %v580_v36 = vld [vmem:[%s2920_s1 + $0x1a0] sm:$0xff] }
  0xf0   :  { %v2441_v60 = vsel %vm759_vm4, %v939_v53, %v2316_v48  ;;  %331 = vadd.xlane.f32.xlu0 %v330_v50  ;;  %v407_v0 = vpop.xlane.xlu1 %406  ;;  %v522_v48 = vsel %vm143_vm0, %v141_v54, 0.0  ;;  %v1644_v7 = vpack.c.bf16 %v537_v47, %v536_v63  ;;  %v581_v53 = vld [vmem:[%s2920_s1 + $0x1a8] sm:$0xff]  ;;  %v540_v54 = vld [vmem:[%s2920_s1 + $0x60] sm:$0xff]  ;;  %1665 = vmatpush3.bf16.msra.mxu1 %v1664_v27  ;;  %v586_v27 = vld [vmem:[%s2920_s1 + $0x1d0] sm:$0xff] }
  0xf1   :  { %v356_v1 = vpop.xlane.xlu0 %355  ;;  %v1191_v10 = vrot.slane %v407_v0, %v2358_v16  ;;  %v1666_v58 = vpack.c.bf16 %v581_v53, %v580_v36  ;;  %v565_v63 = vld [vmem:[%s2920_s1 + $0x128] sm:$0xff]  ;;  %v570_v53 = vld [vmem:[%s2920_s1 + $0x150] sm:$0xff] }
  0xf2   :  { %v1107_v11 = vrot.slane %v356_v1, %v2266_v23  ;;  %1645 = vmatpush3.bf16.msra.mxu0 %v1644_v7  ;;  %v126_v1 = vld [vmem:[%s2919_s0 + $0x378] sm:$0xff] }
  0xf3   :  { %v2480_v21 = vsel %vm780_vm7, %v1191_v10, %v2342_v2  ;;  %523 = vadd.xlane.f32.xlu1 %v522_v48  ;;  %v539_v2 = vld [vmem:[%s2920_s1 + $0x58] sm:$0xff]  ;;  %1647 = vmatprep.subr.bf16.mxu0 %v1646_v29  ;;  %v566_v29 = vld [vmem:[%s2920_s1 + $0x130] sm:$0xff] }
  0xf4   :  { %v2484_v49 = vsel %vm773_vm6, %v1107_v11, %v2345_v3  ;;  %472 = vadd.xlane.f32.xlu0 %v471_v4  ;;  %v497_v31 = vpop.xlane.xlu1 %496  ;;  %v333_v3 = vsel %vm143_vm0, %v78_v12, 0.0  ;;  %v1648_v34 = vpack.c.bf16 %v539_v2, %v538_v25  ;;  %v62_v48 = vld [vmem:[%s2919_s0 + $0x178] sm:$0xff]  ;;  %v1668_v4 = vpack.c.bf16 %v565_v63, %v564_v62  ;;  %1667 = vmatprep.subr.bf16.mxu1 %v1666_v58  ;;  %v589_v58 = vld [vmem:[%s2920_s1 + $0x1e8] sm:$0xff] }
  0xf5   :  { %v446_v32 = vpop.xlane.xlu0 %445  ;;  %v1339_v39 = vrot.slane %v497_v31, %v2212_v41  ;;  %v559_v7 = vld [vmem:[%s2920_s1 + $0xf8] sm:$0xff]  ;;  %v285_v19 = vsel %vm143_vm0, %v62_v48, 0.0  ;;  %v1672_v31 = vpack.c.bf16 %v567_v30, %v566_v29 }
  0xf6   :  { %v1255_v40 = vrot.slane %v446_v32, %v2147_v51  ;;  %v557_v51 = vld [vmem:[%s2920_s1 + $0xe8] sm:$0xff]  ;;  %1649 = vmatpush3.bf16.msra.mxu0 %v1648_v34  ;;  %v1654_v11 = vpack.c.bf16 %v559_v7, %v558_v6  ;;  %v583_v12 = vld [vmem:[%s2920_s1 + $0x1b8] sm:$0xff]  ;;  %1669 = vmatpush3.bf16.msra.mxu1 %v1668_v4  ;;  %v584_v32 = vld [vmem:[%s2920_s1 + $0x1c0] sm:$0xff] }
  0xf7   :  { %v2525_v50 = vsel %vm766_vm5, %v1339_v39, %v2374_v22  ;;  %334 = vadd.xlane.f32.xlu1 %v333_v3  ;;  %v1650_v52 = vpack.c.bf16 %v557_v51, %v556_v46  ;;  %v541_v22 = vld [vmem:[%s2920_s1 + $0x68] sm:$0xff]  ;;  %v1670_v20 = vpack.c.bf16 %v583_v12, %v582_v8  ;;  %v587_v46 = vld [vmem:[%s2920_s1 + $0x1d8] sm:$0xff]  ;;  %v574_v12 = vld [vmem:[%s2920_s1 + $0x170] sm:$0xff] }
  0xf8   :  { %v2529_v37 = vsel %vm759_vm4, %v1255_v40, %v2378_v24  ;;  %283 = vadd.xlane.f32.xlu0 %v282_v28  ;;  %v218_v55 = vpop.xlane.xlu1 %217  ;;  %v525_v24 = vsel %vm143_vm0, %v142_v45, 0.0  ;;  %v1652_v61 = vpack.c.bf16 %v541_v22, %v540_v54  ;;  %v585_v3 = vld [vmem:[%s2920_s1 + $0x1c8] sm:$0xff]  ;;  %v1676_v45 = vpack.c.bf16 %v569_v38, %v568_v35  ;;  %v571_v54 = vld [vmem:[%s2920_s1 + $0x158] sm:$0xff] }
  0xf9   :  { %v167_v56 = vpop.xlane.xlu0 %166  ;;  %v880_v47 = vrot.slane %v218_v55, %v2506_v44  ;;  %1651 = vmatprep.subr.bf16.mxu0 %v1650_v52  ;;  %1671 = vmatprep.subr.bf16.mxu1 %v1670_v20  ;;  %v1674_v34 = vpack.c.bf16 %v585_v3, %v584_v32  ;;  %v1678_v52 = vpack.c.bf16 %v587_v46, %v586_v27  ;;  %v591_v6 = vld [vmem:[%s2920_s1 + $0x1f8] sm:$0xff] }
  0xfa   :  { %v779_v0 = vrot.slane %v167_v56, %v2358_v16  ;;  %1653 = vmatpush3.bf16.msra.mxu0 %v1652_v61  ;;  %1673 = vmatpush3.bf16.msra.mxu1 %v1672_v31  ;;  %v1680_v56 = vpack.c.bf16 %v571_v54, %v570_v53 }
  0xfb   :  { %v2567_v9 = vsel %vm787_vm8, %v880_v47, %v2404_v42  ;;  %526 = vadd.xlane.f32.xlu1 %v525_v24  ;;  %v543_v42 = vld [vmem:[%s2920_s1 + $0x78] sm:$0xff]  ;;  %1655 = vmatprep.subr.bf16.mxu0 %v1654_v11  ;;  %v573_v47 = vld [vmem:[%s2920_s1 + $0x168] sm:$0xff] }
  0xfc   :  { %v2571_v10 = vsel %vm780_vm7, %v779_v0, %v2408_v43  ;;  %475 = vadd.xlane.f32.xlu0 %v474_v57  ;;  %v308_v14 = vpop.xlane.xlu1 %307  ;;  %v477_v43 = vsel %vm143_vm0, %v126_v1, 0.0  ;;  %v1656_v5 = vpack.c.bf16 %v543_v42, %v542_v13  ;;  %1675 = vmatprep.subr.bf16.mxu1 %v1674_v34  ;;  %v2630_v57 = vsub.s32 %v789_v26, %v2026_v18  ;;  %v575_v13 = vld [vmem:[%s2920_s1 + $0x178] sm:$0xff] }
  0xfd   :  { %v257_v17 = vpop.xlane.xlu0 %256  ;;  %v1028_v25 = vrot.slane %v308_v14, %v2266_v23  ;;  %vm1391_vm0 = vcmask 1041409  }
  0xfe   :  { %v944_v2 = vrot.slane %v257_v17, %v2212_v41  ;;  %1657 = vmatpush3.bf16.msra.mxu0 %v1656_v5  ;;  %1677 = vmatpush3.bf16.msra.mxu1 %v1676_v45  ;;  %v1688_v17 = vpack.c.bf16 %v575_v13, %v574_v12 }
  0xff   :  { %v1029_v28 = vsel %vm773_vm6, %v1028_v25, %v2437_v59  ;;  %478 = vadd.xlane.f32.xlu1 %v477_v43  ;;  %1679 = vmatprep.subr.bf16.mxu1 %v1678_v52  ;;  %v796_v25 = vadd.s32 4294967216, %v2022_v15 }
 0x100   :  { %v945_v33 = vsel %vm766_vm5, %v944_v2, %v2441_v60  ;;  %286 = vadd.xlane.f32.xlu0 %v285_v19  ;;  %v410_v39 = vpop.xlane.xlu1 %409 }
 0x101   :  { %v359_v40 = vpop.xlane.xlu0 %358  ;;  %v1196_v59 = vrot.slane %v410_v39, %v2506_v44 }
 0x102   :  { %v1112_v60 = vrot.slane %v359_v40, %v2358_v16  ;;  %1681 = vmatpush3.bf16.msra.mxu1 %v1680_v56  ;;  %v803_v56 = vadd.s32 4294967208, %v2022_v15 }
 0x103   :  { %v1197_v51 = vsel %vm787_vm8, %v1196_v59, %v2480_v21 }
 0x104   :  { %v1113_v36 = vsel %vm780_vm7, %v1112_v60, %v2484_v49  ;;  %v500_v22 = vpop.xlane.xlu1 %499  ;;  %v588_v49 = vld [vmem:[%s2920_s1 + $0x1e0] sm:$0xff] }
 0x105   :  { %v449_v55 = vpop.xlane.xlu0 %448  ;;  %v1344_v24 = vrot.slane %v500_v22, %v2266_v23  ;;  %v1682_v63 = vpack.c.bf16 %v589_v58, %v588_v49 }
 0x106   :  { %v1260_v21 = vrot.slane %v449_v55, %v2212_v41  ;;  %v572_v41 = vld [vmem:[%s2920_s1 + $0x160] sm:$0xff] }
 0x107   :  { %v1345_v61 = vsel %vm773_vm6, %v1344_v24, %v2525_v50  ;;  %v1684_v48 = vpack.c.bf16 %v573_v47, %v572_v41  ;;  %1683 = vmatprep.subr.bf16.mxu1 %v1682_v63  ;;  %v2700_v63 = vsub.s32 %v803_v56, %v2026_v18 }
 0x108   :  { %v1261_v62 = vsel %vm766_vm5, %v1260_v21, %v2529_v37  ;;  %v221_v0 = vpop.xlane.xlu1 %220  ;;  %v590_v37 = vld [vmem:[%s2920_s1 + $0x1f0] sm:$0xff] }
 0x109   :  { %v170_v1 = vpop.xlane.xlu0 %169  ;;  %v885_v4 = vrot.slane %v221_v0, %v2630_v57  ;;  %v1686_v11 = vpack.c.bf16 %v591_v6, %v590_v37  ;;  %1685 = vmatpush3.bf16.msra.mxu1 %v1684_v48 }
 0x10a   :  { %v786_v50 = vrot.slane %v170_v1, %v2506_v44 }
 0x10b   :  { %v886_v7 = vsel %vm794_vm9, %v885_v4, %v2567_v9  ;;  %1687 = vmatprep.subr.bf16.mxu1 %v1686_v11 }
 0x10c   :  { %v788_v8 = vsel %vm787_vm8, %v786_v50, %v2571_v10  ;;  %v311_v42 = vpop.xlane.xlu1 %310 }
 0x10d   :  { %v260_v14 = vpop.xlane.xlu0 %259  ;;  %v1033_v43 = vrot.slane %v311_v42, %v2358_v16  ;;  %1689 = vmatpush3.bf16.msra.mxu1 %v1688_v17 }
 0x10e   :  { %v949_v9 = vrot.slane %v260_v14, %v2266_v23 }
 0x10f   :  { %v1034_v10 = vsel %vm780_vm7, %v1033_v43, %v1029_v28 }
 0x110   :  { %v950_v19 = vsel %vm773_vm6, %v949_v9, %v945_v33  ;;  %v413_v20 = vpop.xlane.xlu1 %412  ;;  %v2678_v33 = vsub.s32 %v796_v25, %v2026_v18 }
 0x111   :  { %v362_v5 = vpop.xlane.xlu0 %361  ;;  %v1201_v29 = vrot.slane %v413_v20, %v2630_v57 }
 0x112   :  { %v1117_v30 = vrot.slane %v362_v5, %v2506_v44 }
 0x113   :  { %v1202_v2 = vsel %vm794_vm9, %v1201_v29, %v1197_v51 }
 0x114   :  { %v1118_v31 = vsel %vm787_vm8, %v1117_v30, %v1113_v36  ;;  %v503_v32 = vpop.xlane.xlu1 %502 }
 0x115   :  { %v452_v3 = vpop.xlane.xlu0 %451  ;;  %v1349_v34 = vrot.slane %v503_v32, %v2358_v16 }
 0x116   :  { %v1265_v28 = vrot.slane %v452_v3, %v2266_v23 }
 0x117   :  { %v1350_v35 = vsel %vm780_vm7, %v1349_v34, %v1345_v61 }
 0x118   :  { %v1266_v38 = vsel %vm773_vm6, %v1265_v28, %v1261_v62  ;;  %v224_v39 = vpop.xlane.xlu1 %223 }
 0x119   :  { %v173_v40 = vpop.xlane.xlu0 %172  ;;  %v890_v45 = vrot.slane %v224_v39, %v2678_v33 }
 0x11a   :  { %v793_v59 = vrot.slane %v173_v40, %v2630_v57 }
 0x11b   :  { %v891_v60 = vsel %vm801_vm10, %v890_v45, %v886_v7 }
 0x11c   :  { %v795_v26 = vsel %vm794_vm9, %v793_v59, %v788_v8  ;;  %v314_v27 = vpop.xlane.xlu1 %313 }
 0x11d   :  { %v263_v23 = vpop.xlane.xlu0 %262  ;;  %v1038_v46 = vrot.slane %v314_v27, %v2506_v44 }
 0x11e   :  { %v954_v51 = vrot.slane %v263_v23, %v2358_v16 }
 0x11f   :  { %v1039_v36 = vsel %vm787_vm8, %v1038_v46, %v1034_v10 }
 0x120   :  { %v955_v52 = vsel %vm780_vm7, %v954_v51, %v950_v19  ;;  %v416_v53 = vpop.xlane.xlu1 %415 }
 0x121   :  { %v365_v54 = vpop.xlane.xlu0 %364  ;;  %v1206_v22 = vrot.slane %v416_v53, %v2678_v33 }
 0x122   :  { %v1122_v55 = vrot.slane %v365_v54, %v2630_v57 }
 0x123   :  { %v2694_v24 = vsel %vm801_vm10, %v1206_v22, %v1202_v2 }
 0x124   :  { %v1123_v21 = vsel %vm794_vm9, %v1122_v55, %v1118_v31  ;;  %v506_v49 = vpop.xlane.xlu1 %505 }
 0x125   :  { %v455_v58 = vpop.xlane.xlu0 %454  ;;  %v1354_v61 = vrot.slane %v506_v49, %v2506_v44 }
 0x126   :  { %v1270_v62 = vrot.slane %v455_v58, %v2358_v16 }
 0x127   :  { %v1355_v41 = vsel %vm787_vm8, %v1354_v61, %v1350_v35  ;;  %v817_v61 = vadd.s32 4294967192, %v2022_v15 }
 0x128   :  { %v1271_v47 = vsel %vm780_vm7, %v1270_v62, %v1266_v38  ;;  %v227_v0 = vpop.xlane.xlu1 %226  ;;  %v824_v62 = vadd.s32 4294967184, %v2022_v15 }
 0x129   :  { %v176_v1 = vpop.xlane.xlu0 %175  ;;  %v895_v48 = vrot.slane %v227_v0, %v2700_v63 }
 0x12a   :  { %v800_v4 = vrot.slane %v176_v1, %v2678_v33 }
 0x12b   :  { %v2707_v50 = vsel %vm808_vm11, %v895_v48, %v891_v60  ;;  %v2776_v48 = vsub.s32 %v817_v61, %v2026_v18 }
 0x12c   :  { %v802_v37 = vsel %vm801_vm10, %v800_v4, %v795_v26  ;;  %v317_v16 = vpop.xlane.xlu1 %316  ;;  %v2779_v4 = vsub.s32 %v824_v62, %v2026_v18 }
 0x12d   :  { %v266_v6 = vpop.xlane.xlu0 %265  ;;  %v1043_v7 = vrot.slane %v317_v16, %v2630_v57 }
 0x12e   :  { %v959_v8 = vrot.slane %v266_v6, %v2506_v44 }
 0x12f   :  { %v1044_v11 = vsel %vm794_vm9, %v1043_v7, %v1039_v36 }
 0x130   :  { %v960_v12 = vsel %vm787_vm8, %v959_v8, %v955_v52  ;;  %v2714_v13 = vpop.xlane.xlu1 %418 }
 0x131   :  { %v368_v42 = vpop.xlane.xlu0 %367 }
 0x132   :  { %v1127_v14 = vrot.slane %v368_v42, %v2678_v33 }
 0x134   :  { %v2718_v17 = vsel %vm801_vm10, %v1127_v14, %v1123_v21  ;;  %v509_v43 = vpop.xlane.xlu1 %508  ;;  %v810_v21 = vadd.s32 4294967200, %v2022_v15 }
 0x135   :  { %v458_v9 = vpop.xlane.xlu0 %457  ;;  %v1359_v10 = vrot.slane %v509_v43, %v2630_v57 }
 0x136   :  { %v1275_v19 = vrot.slane %v458_v9, %v2506_v44 }
 0x137   :  { %v2723_v20 = vsel %vm794_vm9, %v1359_v10, %v1355_v41  ;;  %v831_v41 = vadd.s32 4294967176, %v2022_v15 }
 0x138   :  { %v1276_v5 = vsel %vm787_vm8, %v1275_v19, %v1271_v47  ;;  %v230_v29 = vpop.xlane.xlu1 %229  ;;  %v2773_v47 = vsub.s32 %v810_v21, %v2026_v18 }
 0x139   :  { %v179_v30 = vpop.xlane.xlu0 %178  ;;  %v2784_v16 = vsub.s32 %v831_v41, %v2026_v18 }
 0x13a   :  { %v807_v25 = vrot.slane %v179_v30, %v2700_v63  ;;  %v900_v6 = vrot.slane %v230_v29, %v2773_v47 }
 0x13c   :  { %v2728_v2 = vsel %vm808_vm11, %v807_v25, %v802_v37  ;;  %v320_v31 = vpop.xlane.xlu1 %319  ;;  %v1211_v37 = vrot.slane %v2714_v13, %v2700_v63  ;;  %v901_v43 = vsel %vm815_vm12, %v900_v6, %v2707_v50 }
 0x13d   :  { %v269_v32 = vpop.xlane.xlu0 %268  ;;  %v1048_v3 = vrot.slane %v320_v31, %v2678_v33 }
 0x13e   :  { %v964_v34 = vrot.slane %v269_v32, %v2630_v57  ;;  %v1212_v18 = vsel %vm808_vm11, %v1211_v37, %v2694_v24 }
 0x13f   :  { %v2733_v44 = vsel %vm801_vm10, %v1048_v3, %v1044_v11 }
 0x140   :  { %v2736_v28 = vsel %vm794_vm9, %v964_v34, %v960_v12  ;;  %v422_v35 = vpop.xlane.xlu1 %421 }
 0x141   :  { %v2738_v38 = vpop.xlane.xlu0 %370  ;;  %v1216_v15 = vrot.slane %v422_v35, %v2773_v47 }
 0x142   :  { %v1132_v35 = vrot.slane %v2738_v38, %v2700_v63 }
 0x143   :  { %v1217_v9 = vsel %vm815_vm12, %v1216_v15, %v1212_v18 }
 0x144   :  { %v2740_v39 = vpop.xlane.xlu1 %511  ;;  %v1133_v38 = vsel %vm808_vm11, %v1132_v35, %v2718_v17 }
 0x145   :  { %v461_v40 = vpop.xlane.xlu0 %460 }
 0x146   :  { %v1280_v45 = vrot.slane %v461_v40, %v2630_v57 }
 0x148   :  { %v2744_v59 = vsel %vm794_vm9, %v1280_v45, %v1276_v5  ;;  %v233_v60 = vpop.xlane.xlu1 %232 }
 0x149   :  { %v2746_v26 = vpop.xlane.xlu0 %181  ;;  %v905_v11 = vrot.slane %v233_v60, %v2776_v48 }
 0x14a   :  { %v814_v40 = vrot.slane %v2746_v26, %v2773_v47 }
 0x14b   :  { %v906_v5 = vsel %vm822_vm13, %v905_v11, %v901_v43 }
 0x14c   :  { %v2748_v27 = vpop.xlane.xlu1 %322 }
 0x14d   :  { %v2750_v23 = vpop.xlane.xlu0 %271 }
 0x14e   :  { %v969_v18 = vrot.slane %v2750_v23, %v2678_v33 }
 0x150   :  { %v425_v46 = vpop.xlane.xlu1 %424 }
 0x151   :  { %v2752_v51 = vpop.xlane.xlu0 %373  ;;  %v1221_v12 = vrot.slane %v425_v46, %v2776_v48 }
 0x152   :  { %v1137_v45 = vrot.slane %v2752_v51, %v2773_v47  ;;  %v816_v51 = vsel %vm815_vm12, %v814_v40, %v2728_v2 }
 0x153   :  { %v1222_v29 = vsel %vm822_vm13, %v1221_v12, %v1217_v9 }
 0x154   :  { %v2754_v36 = vpop.xlane.xlu1 %514  ;;  %v1138_v62 = vsel %vm815_vm12, %v1137_v45, %v1133_v38 }
 0x155   :  { %v2756_v52 = vpop.xlane.xlu0 %463 }
 0x156   :  { %v1285_v43 = vrot.slane %v2756_v52, %v2678_v33 }
 0x158   :  { %v236_v53 = vpop.xlane.xlu1 %235 }
 0x159   :  { %v2758_v54 = vpop.xlane.xlu0 %184  ;;  %v910_v42 = vrot.slane %v236_v53, %v2779_v4 }
 0x15a   :  { %v821_v53 = vrot.slane %v2758_v54, %v2776_v48 }
 0x15b   :  { %v911_v24 = vsel %vm829_vm14, %v910_v42, %v906_v5  ;;  %v1364_v42 = vrot.slane %v2740_v39, %v2678_v33  ;;  %v970_v33 = vsel %vm801_vm10, %v969_v18, %v2736_v28 }
 0x15c   :  { %v2760_v57 = vpop.xlane.xlu1 %325  ;;  %v823_v54 = vsel %vm822_vm13, %v821_v53, %v816_v51 }
 0x15d   :  { %v2762_v22 = vpop.xlane.xlu0 %274  ;;  %v1058_v9 = vrot.slane %v2760_v57, %v2773_v47  ;;  %v1365_v23 = vsel %vm801_vm10, %v1364_v42, %v2723_v20 }
 0x15e   :  { %v974_v20 = vrot.slane %v2762_v22, %v2700_v63 }
 0x160   :  { %v428_v55 = vpop.xlane.xlu1 %427 }
 0x161   :  { %v377_v56 = vpop.xlane.xlu0 %376  ;;  %v1226_v13 = vrot.slane %v428_v55, %v2779_v4 }
 0x162   :  { %v1142_v55 = vrot.slane %v377_v56, %v2776_v48 }
 0x163   :  { %v1227_v25 = vsel %vm829_vm14, %v1226_v13, %v1222_v29  ;;  %v1053_v13 = vrot.slane %v2748_v27, %v2700_v63 }
 0x164   :  { %v2765_v49 = vpop.xlane.xlu1 %517  ;;  %v1143_v56 = vsel %vm822_vm13, %v1142_v55, %v1138_v62 }
 0x165   :  { %v2767_v58 = vpop.xlane.xlu0 %466 }
 0x168   :  { %v239_v0 = vpop.xlane.xlu1 %238 }
 0x169   :  { %v188_v1 = vpop.xlane.xlu0 %187  ;;  %v915_v14 = vrot.slane %v239_v0, %v2784_v16 }
 0x16a   :  { %v828_v21 = vrot.slane %v188_v1, %v2779_v4 }
 0x16b   :  { %v916_v31 = vsel %vm836_vm15, %v915_v14, %v911_v24  ;;  %v1369_v14 = vrot.slane %v2754_v36, %v2700_v63  ;;  %v1054_v36 = vsel %vm808_vm11, %v1053_v13, %v2733_v44  ;;  %v1290_v44 = vrot.slane %v2767_v58, %v2700_v63 }
 0x16c   :  { %v2788_v7 = vpop.xlane.xlu1 %328  ;;  %v830_v37 = vsel %vm829_vm14, %v828_v21, %v823_v54  ;;  %v1059_v29 = vsel %vm815_vm12, %v1058_v9, %v1054_v36 }
 0x16d   :  { %v2790_v8 = vpop.xlane.xlu0 %277  ;;  %v1063_v39 = vrot.slane %v2788_v7, %v2776_v48  ;;  %v1370_v57 = vsel %vm808_vm11, %v1369_v14, %v1365_v23 }
 0x16f   :  { %v1064_v24 = vsel %vm822_vm13, %v1063_v39, %v1059_v29 }
 0x170   :  { %v431_v10 = vpop.xlane.xlu1 %430 }
 0x171   :  { %v380_v19 = vpop.xlane.xlu0 %379  ;;  %v1231_v30 = vrot.slane %v431_v10, %v2784_v16  ;;  %v1374_v10 = vrot.slane %v2765_v49, %v2773_v47  ;;  %v1286_v49 = vsel %vm801_vm10, %v1285_v43, %v2744_v59  ;;  %v979_v59 = vrot.slane %v2790_v8, %v2773_v47 }
 0x172   :  { %v1147_v61 = vrot.slane %v380_v19, %v2779_v4 }
 0x173   :  { %v1232_v50 = vsel %vm836_vm15, %v1231_v30, %v1227_v25  ;;  %v1375_v30 = vsel %vm815_vm12, %v1374_v10, %v1370_v57 }
 0x174   :  { %v521_v32 = vpop.xlane.xlu1 %520  ;;  %v1393_v34 = vsel %vm1391_vm0, %v1232_v50, %v916_v31  ;;  %v1148_v6 = vsel %vm829_vm14, %v1147_v61, %v1143_v56 }
 0x175   :  { %v2809_v3 = vpop.xlane.xlu0 %469  ;;  %1464 = vmatprep.mubr.f32.mxu0 %v1393_v34  ;;  %v1379_v52 = vrot.slane %v521_v32, %v2776_v48 }
 0x176   :  { %v1295_v25 = vrot.slane %v2809_v3, %v2773_v47  ;;  %v975_v47 = vsel %vm808_vm11, %v974_v20, %v970_v33  ;;  %v1291_v3 = vsel %vm808_vm11, %v1290_v44, %v1286_v49 }
 0x177   :  { %v1380_v32 = vsel %vm822_vm13, %v1379_v52, %v1375_v30 }
 0x178   :  { %v2818_v60 = vpop.xlane.xlu1 %280 }
 0x179   :  { %v191_v46 = vpop.xlane.xlu0 %190  ;;  %v984_v22 = vrot.slane %v2818_v60, %v2776_v48 }
 0x17a   :  { %v835_v26 = vrot.slane %v191_v46, %v2784_v16  ;;  %v1296_v46 = vsel %vm815_vm12, %v1295_v25, %v1291_v3 }
 0x17c   :  { %v383_v41 = vpop.xlane.xlu1 %382  ;;  %v837_v17 = vsel %vm836_vm15, %v835_v26, %v830_v37 }
 0x17d   :  { %v332_v0 = vpop.xlane.xlu0 %331  ;;  %v1152_v1 = vrot.slane %v383_v41, %v2784_v16 }
 0x17e   :  { %v1068_v7 = vrot.slane %v332_v0, %v2779_v4 }
 0x17f   :  { %v1153_v15 = vsel %vm836_vm15, %v1152_v1, %v1148_v6  ;;  %v1555_v6 = vld [vmem:[%s2921_s2] ss:$0 sm:$0xff] }
 0x180   :  { %v524_v11 = vpop.xlane.xlu1 %523  ;;  %v1392_v12 = vsel %vm1391_vm0, %v1153_v15, %v837_v17  ;;  %v1069_v8 = vsel %vm829_vm14, %v1068_v7, %v1064_v24 }
 0x181   :  { %v473_v2 = vpop.xlane.xlu0 %472  ;;  %1465 = vmatmul.mubr.f32.vlgmr.msra.gmra.mrb[0].mxu0 %v1392_v12  ;;  %v1384_v5 = vrot.slane %v524_v11, %v2779_v4 }
 0x182   :  { %v1300_v63 = vrot.slane %v473_v2, %v2776_v48  ;;  %v980_v48 = vsel %vm815_vm12, %v979_v59, %v975_v47 }
 0x183   :  { %v1385_v40 = vsel %vm829_vm14, %v1384_v5, %v1380_v32  ;;  %v985_v21 = vsel %vm822_vm13, %v984_v22, %v980_v48 }
 0x184   :  { %v335_v27 = vpop.xlane.xlu1 %334  ;;  %v1301_v61 = vsel %vm822_vm13, %v1300_v63, %v1296_v46 }
 0x185   :  { %v284_v19 = vpop.xlane.xlu0 %283  ;;  %v1073_v28 = vrot.slane %v335_v27, %v2784_v16 }
 0x186   :  { %v989_v34 = vrot.slane %v284_v19, %v2779_v4 }
 0x187   :  { %v1074_v45 = vsel %vm836_vm15, %v1073_v28, %v1069_v8 }
 0x188   :  { %v527_v31 = vpop.xlane.xlu1 %526  ;;  %v990_v51 = vsel %vm829_vm14, %v989_v34, %v985_v21 }
 0x189   :  { %v476_v50 = vpop.xlane.xlu0 %475  ;;  %v1389_v58 = vrot.slane %v527_v31, %v2784_v16 }
 0x18a   :  { %v1305_v35 = vrot.slane %v476_v50, %v2779_v4 }
 0x18b   :  { %v1390_v60 = vsel %vm836_vm15, %v1389_v58, %v1385_v40 }
 0x18c   :  { %v479_v53 = vpop.xlane.xlu1 %478  ;;  %v1395_v4 = vsel %vm1391_vm0, %v1390_v60, %v1074_v45  ;;  %v1306_v62 = vsel %vm829_vm14, %v1305_v35, %v1301_v61 }
 0x18d   :  { %v287_v55 = vpop.xlane.xlu0 %286  ;;  %v1310_v38 = vrot.slane %v479_v53, %v2784_v16  ;;  %1534 = vmatprep.mubr.f32.mxu1 %v1395_v4 }
 0x18e   :  { %v994_v26 = vrot.slane %v287_v55, %v2784_v16 }
 0x18f   :  { %v1311_v0 = vsel %vm836_vm15, %v1310_v38, %v1306_v62 }
 0x190   :  { %v995_v41 = vsel %vm836_vm15, %v994_v26, %v990_v51 }
 0x191   :  { %v1394_v54 = vsel %vm1391_vm0, %v1311_v0, %v995_v41 }
 0x192   :  { %1535 = vmatmul.mubr.f32.vlgmr.msra.gmra.mrb[0].mxu1 %v1394_v54 }
 0x254   :  { %v1588_v56 = vpop.f32.mrb[0].mxu0 }
 0x255   :  { %v1589_v1 = vpop.f32.mrb[1].mxu0 }
 0x256   :  { %v1590_v37 = vadd.f32 %v1589_v1, %v1588_v56 }
 0x258   :  { %v1467_v15 = vadd.f32 %v1590_v37, %v1555_v6 }
 0x265   :  { %v1623_v16 = vpop.f32.mrb[0].mxu1 }
 0x266   :  { %v1624_v17 = vpop.f32.mrb[1].mxu1 }
 0x267   :  { %v1625_v11 = vadd.f32 %v1624_v17, %v1623_v16 }
 0x269   :  { %v1537_v2 = vadd.f32 %v1625_v11, %v1467_v15 }
 0x26b   :  { %1540 = vst [vmem:[#allocation2] sm:$0x3] %v1537_v2 }
 0x26c   :  { %1702 = shalt.err (!%p1699_p4)
}
 0x26d   :  { %s1703_s2 = scalar_lea.hbm %s2922_s3, 32 }
 0x26e   :  { %p1704_p5 = scmp.ne.s32.totalorder %s2922_s3, %s1703_s2  ;;  %p1707_p6 = scmp.lt.u32.totalorder %s1703_s2, %s2922_s3 }
 0x270   :  { %p1709_p7 = pnand %p1707_p6, %p1704_p5 }
 0x272   :  { %1712 = shalt.err (!%p1709_p7)
}
 0x273   :  { %1550 = dma.vmem_to_hbm [thread:$0]  %s1548_s18, 32, %s2922_s3, [#allocation3]  }
 0x274   :  { %1713 = dma.done.wait [#allocation3], 32  }
 0x275   :  { %1714 = vsyncadd [#allocation3], 4294967264 }
 0x276   :  { %1554 = vsyncpa [#allocation3], 1 }

</bundles_post_ra>
